<compile_context>
chip_gen: v6e
topology: v6e:2x2x1
jax: 0.10.0
libtpu: 0.0.40
codegen_flags: <defaults>
</compile_context>

<pallas_src>
import jax
import jax.numpy as jnp
from jax.experimental import pallas as pl
from jax.experimental.pallas import tpu as pltpu


def _round_up(x, m):
    return ((x + m - 1) // m) * m


def _pick_bpg(B, C, HW, itemsize, budget_bytes=6 << 20):
    """Whole samples per block.

    * Per-block VMEM footprint (with (8,128) sublane/lane padding) stays under
      `budget_bytes` so double-buffered in+out (+ temps) fits scoped VMEM.
    * Keeps the grid at >= 2 steps whenever B >= 2 so the parallel axis can be
      split across both TensorCores on v7x.
    """
    vmem_per_sample = _round_up(C, 8) * _round_up(HW, 128) * itemsize
    max_bpg = max(1, budget_bytes // vmem_per_sample)
    if B >= 2:
        max_bpg = min(max_bpg, B // 2)        # never collapse to a 1-step grid
    max_bpg = max(1, min(max_bpg, B))
    for bpg in range(max_bpg, 0, -1):         # largest divisor of B under the cap
        if B % bpg == 0:
            return bpg
    return 1


def _pack_params(w1, b1, w2, b2, w_conv, b_conv, C, CR):
    """Pack all tiny parameters into a single lane/sublane-padded f32 tile.

    Layout (rows x cols):
      [0:CR,      0:C   ]  W1            (CR, C)
      [CR:CR+C,   0:CR  ]  W2            (C, CR)
      [CR:CR+C,   CR    ]  conv weight   (C,)  -- stored as a column
      [CR+C,      0:CR  ]  b1
      [CR+C,      CR:CR+C] b2
      [CR+C,      CR+C  ]  conv bias
    """
    rows_needed = CR + C + 1
    cols_needed = max(C, CR + 1, CR + C + 1)
    PR = _round_up(rows_needed, 8)
    PC = _round_up(cols_needed, 128)
    pp = jnp.zeros((PR, PC), jnp.float32)
    pp = pp.at[0:CR, 0:C].set(w1.astype(jnp.float32))
    pp = pp.at[CR:CR + C, 0:CR].set(w2.astype(jnp.float32))
    pp = pp.at[CR:CR + C, CR].set(w_conv.astype(jnp.float32))
    pp = pp.at[CR + C, 0:CR].set(b1.astype(jnp.float32))
    pp = pp.at[CR + C, CR:CR + C].set(b2.astype(jnp.float32))
    pp = pp.at[CR + C, CR + C].set(b_conv.astype(jnp.float32)[0])
    return pp


def _make_kernel(*, C, CR, inv_hw, out_dtype):
    def kernel(x_ref, pp_ref, o_ref):
        x3 = x_ref[...]                                       # (bpg, C, HW), native dtype
        xf = x3.astype(jnp.float32)

        # ---- unpack the single consolidated parameter tile (static slices) ----
        w1 = pp_ref[0:CR, 0:C]                                # (CR, C)
        w2 = pp_ref[CR:CR + C, 0:CR]                          # (C, CR)
        wc = pp_ref[CR:CR + C, CR:CR + 1]                     # (C, 1) conv weight (sublane oriented)
        b1 = pp_ref[CR + C:CR + C + 1, 0:CR]                  # (1, CR)
        b2 = pp_ref[CR + C:CR + C + 1, CR:CR + C]             # (1, C)
        bc = pp_ref[CR + C:CR + C + 1, CR + C:CR + C + 1]     # (1, 1)

        # ---- cSE: per-(b,c) spatial mean (lane reduce) -> tiny MLP on VPU/XLU ----
        z = jnp.sum(xf, axis=2) * inv_hw                      # (bpg, C)
        h = jnp.maximum(
            jnp.sum(z[:, None, :] * w1[None, :, :], axis=-1) + b1, 0.0)           # (bpg, CR)
        s = jax.nn.sigmoid(
            jnp.sum(h[:, None, :] * w2[None, :, :], axis=-1) + b2)                # (bpg, C)
        s3 = s[:, :, None]                                    # (bpg, C, 1) per-channel gate

        # ---- sSE: 1x1 conv over channels = VPU multiply + sublane reduce ----
        q = jax.nn.sigmoid(
            jnp.sum(xf * wc[None, :, :], axis=1, keepdims=True) + bc)             # (bpg, 1, HW)

        # ---- concurrent excitation: implicit broadcasts, no materialized copies ----
        o_ref[...] = jnp.maximum(xf * s3, xf * q).astype(out_dtype)

    return kernel


def channel_spatial_se(x, w1, b1, w2, b2, w_conv, b_conv):
    """x: (B, C, H, W). Params follow nn.Linear / nn.Conv2d(1x1) shapes."""
    B, C, H, W = x.shape
    CR = w1.shape[0]
    HW = H * W
    in_dtype = x.dtype
    itemsize = jnp.dtype(in_dtype).itemsize

    # Free reshape (contiguous trailing dims); no pad, no dtype cast over the wire.
    x3 = x.reshape(B, C, HW)

    bpg = _pick_bpg(B, C, HW, itemsize)
    grid = (B // bpg,)

    pp = _pack_params(w1, b1, w2, b2, w_conv, b_conv, C, CR)
    PR, PC = pp.shape

    # VMEM budget: double-buffered in + out blocks, ~2 f32 elementwise temporaries,
    # the param tile, plus slack. Capped at 48 MiB (safe on v5e/v6e/v7x).
    blk_elems = bpg * _round_up(C, 8) * _round_up(HW, 128)
    needed = (4 * blk_elems * itemsize          # 2x in + 2x out (double-buffered)
              + 2 * blk_elems * 4               # f32 elementwise temporaries
              + 2 * PR * PC * 4                 # param tile (double-buffered)
              + (2 << 20))                      # slack
    vmem_limit = int(min(max(needed, 16 << 20), 48 << 20))

    kernel = _make_kernel(C=C, CR=CR, inv_hw=1.0 / HW, out_dtype=in_dtype)

    out3 = pl.pallas_call(
        kernel,
        out_shape=jax.ShapeDtypeStruct((B, C, HW), in_dtype),
        grid_spec=pltpu.PrefetchScalarGridSpec(
            num_scalar_prefetch=0,
            grid=grid,
            in_specs=[
                # bpg whole samples; last two dims are full array extents (legal
                # even when C < 8 or HW is not a multiple of 128).
                pl.BlockSpec((bpg, C, HW), lambda i: (i, 0, 0)),
                pl.BlockSpec((PR, PC), lambda i: (0, 0)),   # consolidated param tile
            ],
            out_specs=pl.BlockSpec((bpg, C, HW), lambda i: (i, 0, 0)),
        ),
        compiler_params=pltpu.CompilerParams(
            dimension_semantics=("parallel",),
            vmem_limit_bytes=vmem_limit,
        ),
    )(x3, pp)

    return out3.reshape(B, C, H, W)


def _reference(x, w1, b1, w2, b2, w_conv, b_conv):
    z = x.reshape(x.shape[0], x.shape[1], -1).mean(axis=2)                 # (B, C)
    h = jnp.maximum(z @ w1.T + b1, 0.0)                                    # (B, Cr)
    s = jax.nn.sigmoid(h @ w2.T + b2)                                      # (B, C)
    cse = x * s[:, :, None, None]
    q = jax.nn.sigmoid(jnp.einsum("bchw,c->bhw", x, w_conv) + b_conv[0])   # (B, H, W)
    sse = x * q[:, None, :, :]
    return jnp.maximum(cse, sse)


if __name__ == "__main__":
    B, C, H, W = 2, 4, 16, 16
    reduction_ratio = 2
    CR = C // reduction_ratio

    key = jax.random.PRNGKey(0)
    keys = jax.random.split(key, 7)

    x = jax.random.normal(keys[0], (B, C, H, W), dtype=jnp.float32)

    # Deterministic parameter init (shapes match nn.Linear / nn.Conv2d(1x1)).
    w1 = jax.random.normal(keys[1], (CR, C), dtype=jnp.float32) * 0.5      # fc1.weight
    b1 = jax.random.normal(keys[2], (CR,), dtype=jnp.float32) * 0.1        # fc1.bias
    w2 = jax.random.normal(keys[3], (C, CR), dtype=jnp.float32) * 0.5      # fc2.weight
    b2 = jax.random.normal(keys[4], (C,), dtype=jnp.float32) * 0.1         # fc2.bias
    w_conv = jax.random.normal(keys[5], (C,), dtype=jnp.float32) * 0.5     # conv.weight (1,C,1,1) flat
    b_conv = jax.random.normal(keys[6], (1,), dtype=jnp.float32) * 0.1     # conv.bias

    out = channel_spatial_se(x, w1, b1, w2, b2, w_conv, b_conv)
    out = jax.block_until_ready(out)

    ref = _reference(x, w1, b1, w2, b2, w_conv, b_conv)
    assert out.shape == (B, C, H, W)
    assert out.dtype == x.dtype
    assert jnp.allclose(out, ref, atol=1e-5, rtol=1e-5), "mismatch vs reference"

    print("KERNEL_OK")
</pallas_src>

<mosaic_0001>
module attributes {stable_mosaic.version = 11 : i64} {
  func.func @kernel(%arg0: i32, %arg1: memref<1x4x256xf32, #tpu.memory_space<vmem>>, %arg2: memref<8x128xf32, #tpu.memory_space<vmem>>, %arg3: memref<1x4x256xf32, #tpu.memory_space<vmem>>) attributes {dimension_semantics = [#tpu.dimension_semantics<parallel>], iteration_bounds = array<i64: 2>, scalar_prefetch = 0 : i64, scratch_operands = 0 : i64, tpu.core_type = #tpu.core_type<tc>, window_params = [{transform_indices = @transform_0, window_bounds = array<i64: 1, 4, 256>}, {pipeline_mode = #tpu.pipeline_mode<synchronous>, transform_indices = @transform_1, window_bounds = array<i64: 8, 128>}, {transform_indices = @transform_2, window_bounds = array<i64: 1, 4, 256>}]} {
    %c0 = arith.constant 0 : index
    %c0_0 = arith.constant 0 : index
    %c0_1 = arith.constant 0 : index
    %0 = vector.load %arg1[%c0, %c0_0, %c0_1] : memref<1x4x256xf32, #tpu.memory_space<vmem>>, vector<1x4x256xf32>
    %c0_2 = arith.constant 0 : index
    %c0_3 = arith.constant 0 : index
    %1 = vector.load %arg2[%c0_2, %c0_3] : memref<8x128xf32, #tpu.memory_space<vmem>>, vector<2x4xf32>
    %c2 = arith.constant 2 : index
    %c0_4 = arith.constant 0 : index
    %2 = vector.load %arg2[%c2, %c0_4] : memref<8x128xf32, #tpu.memory_space<vmem>>, vector<4x2xf32>
    %c2_5 = arith.constant 2 : index
    %c2_6 = arith.constant 2 : index
    %3 = vector.load %arg2[%c2_5, %c2_6] : memref<8x128xf32, #tpu.memory_space<vmem>>, vector<4x1xf32>
    %c6 = arith.constant 6 : index
    %c0_7 = arith.constant 0 : index
    %4 = vector.load %arg2[%c6, %c0_7] : memref<8x128xf32, #tpu.memory_space<vmem>>, vector<1x2xf32>
    %c6_8 = arith.constant 6 : index
    %c2_9 = arith.constant 2 : index
    %5 = vector.load %arg2[%c6_8, %c2_9] : memref<8x128xf32, #tpu.memory_space<vmem>>, vector<1x4xf32>
    %c6_10 = arith.constant 6 : index
    %c6_11 = arith.constant 6 : index
    %6 = vector.load %arg2[%c6_10, %c6_11] : memref<8x128xf32, #tpu.memory_space<vmem>>, vector<1x1xf32>
    %cst = arith.constant dense<0.000000e+00> : vector<1x4xf32>
    %7 = vector.multi_reduction <add>, %0, %cst [2] : vector<1x4x256xf32> to vector<1x4xf32>
    %cst_12 = arith.constant 3.906250e-03 : f32
    %8 = vector.broadcast %cst_12 : f32 to vector<1x4xf32>
    %9 = arith.mulf %7, %8 : vector<1x4xf32>
    %10 = vector.shape_cast %9 : vector<1x4xf32> to vector<1x1x4xf32>
    %11 = vector.shape_cast %1 : vector<2x4xf32> to vector<1x2x4xf32>
    %12 = vector.broadcast %10 : vector<1x1x4xf32> to vector<1x2x4xf32>
    %13 = arith.mulf %12, %11 : vector<1x2x4xf32>
    %cst_13 = arith.constant dense<0.000000e+00> : vector<1x2xf32>
    %14 = vector.multi_reduction <add>, %13, %cst_13 [2] : vector<1x2x4xf32> to vector<1x2xf32>
    %15 = arith.addf %14, %4 : vector<1x2xf32>
    %cst_14 = arith.constant 0.000000e+00 : f32
    %16 = vector.broadcast %cst_14 : f32 to vector<1x2xf32>
    %17 = arith.maximumf %15, %16 : vector<1x2xf32>
    %18 = vector.shape_cast %17 : vector<1x2xf32> to vector<1x1x2xf32>
    %19 = vector.shape_cast %2 : vector<4x2xf32> to vector<1x4x2xf32>
    %20 = vector.broadcast %18 : vector<1x1x2xf32> to vector<1x4x2xf32>
    %21 = arith.mulf %20, %19 : vector<1x4x2xf32>
    %cst_15 = arith.constant dense<0.000000e+00> : vector<1x4xf32>
    %22 = vector.multi_reduction <add>, %21, %cst_15 [2] : vector<1x4x2xf32> to vector<1x4xf32>
    %23 = arith.addf %22, %5 : vector<1x4xf32>
    %24 = arith.negf %23 : vector<1x4xf32>
    %25 = math.exp %24 : vector<1x4xf32>
    %cst_16 = arith.constant 1.000000e+00 : f32
    %26 = vector.broadcast %cst_16 : f32 to vector<1x4xf32>
    %27 = arith.addf %26, %25 : vector<1x4xf32>
    %28 = arith.divf %26, %27 : vector<1x4xf32>
    %29 = vector.shape_cast %28 : vector<1x4xf32> to vector<1x4x1xf32>
    %30 = vector.shape_cast %3 : vector<4x1xf32> to vector<1x4x1xf32>
    %31 = vector.broadcast %30 : vector<1x4x1xf32> to vector<1x4x256xf32>
    %32 = arith.mulf %0, %31 : vector<1x4x256xf32>
    %cst_17 = arith.constant dense<0.000000e+00> : vector<1x256xf32>
    %33 = vector.multi_reduction <add>, %32, %cst_17 [1] : vector<1x4x256xf32> to vector<1x256xf32>
    %34 = vector.shape_cast %33 : vector<1x256xf32> to vector<1x1x256xf32>
    %35 = vector.shape_cast %6 : vector<1x1xf32> to vector<1x1x1xf32>
    %36 = vector.broadcast %35 : vector<1x1x1xf32> to vector<1x1x256xf32>
    %37 = arith.addf %34, %36 : vector<1x1x256xf32>
    %38 = arith.negf %37 : vector<1x1x256xf32>
    %39 = math.exp %38 : vector<1x1x256xf32>
    %cst_18 = arith.constant 1.000000e+00 : f32
    %40 = vector.broadcast %cst_18 : f32 to vector<1x1x256xf32>
    %41 = arith.addf %40, %39 : vector<1x1x256xf32>
    %42 = arith.divf %40, %41 : vector<1x1x256xf32>
    %43 = vector.broadcast %29 : vector<1x4x1xf32> to vector<1x4x256xf32>
    %44 = arith.mulf %0, %43 : vector<1x4x256xf32>
    %45 = vector.broadcast %42 : vector<1x1x256xf32> to vector<1x4x256xf32>
    %46 = arith.mulf %0, %45 : vector<1x4x256xf32>
    %47 = arith.maximumf %44, %46 : vector<1x4x256xf32>
    %c0_19 = arith.constant 0 : index
    %c0_20 = arith.constant 0 : index
    %c0_21 = arith.constant 0 : index
    %48 = vector.load %arg3[%c0_19, %c0_20, %c0_21] : memref<1x4x256xf32, #tpu.memory_space<vmem>>, vector<1x4x256xf32>
    tpu.vector_store %arg3[%c0_19, %c0_20, %c0_21], %47 {strides = array<i32>} : memref<1x4x256xf32, #tpu.memory_space<vmem>>, vector<1x4x256xf32>,
    return
  }
  func.func @transform_0(%arg0: i32) -> (i32, i32, i32) {
    %c0_i32 = arith.constant 0 : i32
    %c0_i32_0 = arith.constant 0 : i32
    %c0_i32_1 = arith.constant 0 : i32
    return %arg0, %c0_i32, %c0_i32_0 : i32, i32, i32
  }
  func.func @transform_1(%arg0: i32) -> (i32, i32) {
    %c0_i32 = arith.constant 0 : i32
    %c0_i32_0 = arith.constant 0 : i32
    %c0_i32_1 = arith.constant 0 : i32
    return %c0_i32, %c0_i32_0 : i32, i32
  }
  func.func @transform_2(%arg0: i32) -> (i32, i32, i32) {
    %c0_i32 = arith.constant 0 : i32
    %c0_i32_0 = arith.constant 0 : i32
    %c0_i32_1 = arith.constant 0 : i32
    return %arg0, %c0_i32, %c0_i32_0 : i32, i32, i32
  }
}

</mosaic_0001>

<bundles_post_ra>
// kernel: tpu_custom_call.1
= control target key start
LH: loop header
LB: loop body
LE: loop exit
PB: predicated region body
PF: predicated region fallthrough
CT: control target
= control target key end

     0   :  { %7 = vsyncpa [#allocation3], 0  ;;  %s948_s0 = inlined_call_operand.hbm [shape: f32[2,4,256], index: 0, kind: input, shape index: {}]   ;;  %s949_s1 = inlined_call_operand.hbm [shape: f32[8,128], index: 1, kind: input, shape index: {}]   ;;  %s950_s2 = inlined_call_operand.hbm [shape: f32[2,4,256], index: 2, kind: output, shape index: {}]  }
   0x1   :  { %9 = vsyncpa [#allocation3 + $0x1], 0 }
   0x2   :  { %10 = vsyncpa [#allocation6], 0 }
   0x3   :  { %11 = vsyncpa [#allocation4], 0 }
   0x4   :  { %13 = vsyncpa [#allocation4 + $0x1], 0  ;;  %s749_s9 = smov 0   ;;  %s751_s10 = smov 0  }
   0x5   :  { %s753_s11 = smov 0   ;;  %s755_s12 = smov 0  }
   0x6 LB: > { %s770_s13 = sadd.s32 4294967295, %s725_s12   ;;  %s503_s14 = sadd.s32 4294967294, %s725_s12   ;;  %s725_s12 = sphi %s755_s12, %s973_s12   ;;  %s721_s11 = sphi %s753_s11, %s972_s11   ;;  %s717_s10 = sphi %s751_s10, %s971_s10   ;;  %s713_s9 = sphi %s749_s9, %s970_s9  }
   0x7   : > { %p39_p0 = scmp.ne.s32.totalorder %s717_s10, %s713_s9  ;;  %p951_p1 = scmp.eq.s32.totalorder %s770_s13, 0 }
   0x8   : > { %p90_p3 = scmp.eq.s32.totalorder %s503_s14, 1  ;;  %p504_p5 = scmp.ge.s32.totalorder %s725_s12, 1 }
   0x9   : > { %p779_p4 = por %p951_p1, %p39_p0  ;;  %p97_p7 = scmp.lt.s32.totalorder %s725_s12, 3 }
   0xa   : > { %p784_p6 = por %p90_p3, %p39_p0  ;;  %s727_s18 = smov [#allocation5]  }
   0xb   : > { %s955_s15 = scalar_select %p779_p4, 1, 0 }
   0xc   : > { %s956_s16 = scalar_select %p784_p6, 1, 0 }
   0xd   : > { %p789_p8 = pnand %p504_p5, %p97_p7  ;;  %s110_s19 = sshll.u32 %s727_s18, 4  ;;  %s111_s19 = int_to_ptr.vmem [resolvable:$true] %s110_s19 }
   0xe   : > { %s797_s20 = sadd.s32 1, %s725_s12   ;;  %s26_s24 = sadd.s32 1, %s721_s11 }
   0xf   : > { %s957_s17 = scalar_select %p789_p8, 1, 0 }
  0x10   : > { %p532_p10 = pneg %p789_p8  ;;  %s23_s22 = ssub.s32 %s725_s12, %s797_s20 }
  0x11   : > { %p807_p12 = scmp.eq.s32.totalorder %s23_s22, 0  ;;  %p33_p13 = scmp.ne.s32.totalorder %s721_s11, %s717_s10 }
  0x12   : > { %p801_p11 = pnand %p532_p10, %p951_p1  ;;  %s614_s25 = scalar_lea.vmem %s111_s19, 128 }
  0x13   : > { %p615_p3 = scmp.ne.s32.totalorder %s111_s19, %s614_s25  ;;  %p622_p9 = scmp.lt.s32.totalorder %s111_s19, %s111_s19 }
  0x14   : > { %p605_p0 = pneg %p801_p11  ;;  %p623_p2 = scmp.lt.s32.totalorder %s614_s25, %s614_s25 }
  0x16   : > { %p617_p5 = pnand %p615_p3, %p605_p0  ;;  %p624_p10 = por %p623_p2, %p622_p9 }
  0x18   : > { %p618_p7 = pneg %p617_p5 }
  0x1a   : > { %p625_p1 = pnand %p624_p10, %p618_p7 }
  0x1c   : > { %628 = shalt.err (!%p625_p1)
}
  0x1d   : > { %535 = dma.hbm_to_vmem [thread:$0]  (!%p801_p11), %s949_s1, 128, %s111_s19, [#allocation6]  }
  0x1e   : > { %s824_s28 = scalar_select %p807_p12, %s721_s11, %s26_s24  }
  0x1f   : > { %p34_p1 = scmp.eq.s32.totalorder %s725_s12, 0  ;;  %p960_p2 = scmp.eq.s32.totalorder %s770_s13, 1 }
  0x20   : > { %p545_p0 = scmp.lt.s32.totalorder %s725_s12, 2  ;;  %s121_s30 = sand.u32 1, %s721_s11  }
  0x21   : > { %p832_p9 = por %p960_p2, %p33_p13  ;;  %p35_p3 = por %p34_p1, %p33_p13 }
  0x22   : > { %s507_s3 = sshll.u32 %s121_s30, 3  ;;  %s522_s4 = sshll.u32 %s725_s12, 7 }
  0x23   : > { %s961_s29 = scalar_select %p832_p9, 1, 0 }
  0x24   : > { %s845_s7 = scalar_lea.hbm %s948_s0, %s522_s4  ;;  %s125_s8 = scalar_lea.vmem [#allocation2], %s507_s3 }
  0x25   : > { %s133_s14 = sshll.u32 %s125_s8, 4  ;;  %p847_p11 = pnand %p545_p0, %p35_p3  ;;  %s134_s14 = int_to_ptr.vmem [resolvable:$true] %s133_s14 }
  0x26   : > { %s122_s19 = scalar_lea.sflag [#allocation3], %s121_s30  ;;  %s629_s21 = scalar_lea.hbm %s845_s7, 128 }
  0x27   : > { %p630_p12 = scmp.ne.s32.totalorder %s845_s7, %s629_s21  ;;  %p631_p13 = pneg %p847_p11 }
  0x28   : > { %s634_s24 = scalar_lea.hbm %s948_s0, 256  ;;  %p635_p10 = scmp.lt.s32.totalorder %s845_s7, %s948_s0 }
  0x29   : > { %p632_p5 = pnand %p631_p13, %p630_p12  ;;  %p636_p1 = scmp.lt.s32.totalorder %s634_s24, %s629_s21 }
  0x2b   : > { %p633_p7 = pneg %p632_p5  ;;  %p637_p2 = por %p636_p1, %p635_p10 }
  0x2d   : > { %p638_p0 = pnand %p637_p2, %p633_p7 }
  0x2f   : > { %641 = shalt.err (!%p638_p0)
}
  0x30   : > { %s642_s27 = scalar_lea.vmem %s134_s14, 128  ;;  %s728_s30 = smov [#allocation2]  }
  0x31   : > { %p643_p3 = scmp.ne.s32.totalorder %s134_s14, %s642_s27  ;;  %s647_s3 = sshll.u32 %s728_s30, 4  ;;  %s648_s3 = int_to_ptr.vmem [resolvable:$false] %s647_s3 }
  0x32   : > { %s649_s4 = scalar_lea.vmem %s648_s3, 256  ;;  %p650_p12 = scmp.lt.s32.totalorder %s134_s14, %s648_s3 }
  0x33   : > { %p645_p6 = pnand %p643_p3, %p631_p13  ;;  %p651_p5 = scmp.lt.s32.totalorder %s649_s4, %s642_s27 }
  0x35   : > { %p646_p9 = pneg %p645_p6  ;;  %p652_p4 = por %p651_p5, %p650_p12 }
  0x37   : > { %p653_p8 = pnand %p652_p4, %p646_p9 }
  0x39   : > { %656 = shalt.err (!%p653_p8)
}
  0x3a   : > { %539 = dma.hbm_to_vmem [thread:$0]  (!%p847_p11), %s845_s7, 128, %s134_s14, %s122_s19  }
  0x3b   : > { %p963_p7 = scmp.ne.s32.totalorder %s957_s17, 0 }
  0x3c   : > { %s868_s5 = sand.u32 (!%p963_p7), 1, %s717_s10   ;;  %p964_p4 = scmp.ne.s32.totalorder (!%p963_p7), %s955_s15, 0 }
  0x3d   : > { %142 = sbr.rel (%p963_p7) target bundleno = 947 (0x3b3), region = 28  ;;  %s511_s6 = sshll.u32 (!%p963_p7), %s868_s5, 3 }
  0x3e   : > { %s145_s8 = scalar_lea.sflag (!%p963_p7), [#allocation3], %s868_s5  ;;  %s148_s21 = scalar_lea.vmem (!%p963_p7), [#allocation2], %s511_s6 }
  0x42   : > { %700 = dma.done.wait (%p964_p4), %s145_s8, 128  }
  0x43   : > { %702 = vsyncadd (%p964_p4), %s145_s8, 4294967168  ;;  %p965_p6 = scmp.eq.s32.totalorder %s770_s13, 0 }
  0x45   : > { %704 = dma.done.wait (%p965_p6), [#allocation6], 128   ;;  %p966_p8 = pmov %p965_p6 }
  0x46   : > { %v188_v0 = vlaneseq  ;;  %vm180_vm0 = vcmask 1043456   ;;  %v885_v3 = vld [vmem:[%s148_s21] sm:$0xff]  ;;  %v174_v4 = vld [vmem:[#allocation5] sm:$0x3]  ;;  %v729_v11 = vmov 0   ;;  %vm224_vm1 = vcmask 1041409  }
  0x47   : > { %706 = vsyncadd (%p966_p8), [#allocation6], 4294967168  ;;  %v178_v5 = vcombine.high %v885_v3, %v885_v3  ;;  %v181_v6 = vsel %vm180_vm0, %v885_v3, 0.0  ;;  %585 = vset.pattern.permute.xlu1 %v729_v11  ;;  %586 = vset.pattern.permute.xlu0 %v729_v11  ;;  %v176_v19 = vld [vmem:[#allocation5 + $0x6] sm:$0x1]  ;;  %vm227_vm2 = vcmask 25600  }
  0x48   : > { %v882_v1 = vshrl.u32 %v188_v0, 7  ;;  %v175_v20 = vld [vmem:[#allocation5 + $0x2] sm:$0xf]  ;;  %v215_v28 = vand.u32 127, %v188_v0  ;;  %v730_v48 = vmov 2   ;;  %v731_v49 = vmov 6  }
  0x49   : > { %v182_v8 = vsel %vm180_vm0, %v178_v5, 0.0  ;;  %vm312_vm3 = vcmask 1042434   ;;  %vm314_vm4 = vcmask 1043459   ;;  %vm317_vm5 = vcmask 11264   ;;  %s523_s15 = sshll.u32 %s770_s13, 7  ;;  %s172_s17 = scalar_lea.vmem [#allocation7], %s511_s6 }
  0x4a   : > { %v197_v2 = vsub.s32 1, %v882_v1  ;;  %v183_v9 = vadd.f32 %v182_v8, %v181_v6  ;;  %v893_v10 = vsub.s32 0, %v882_v1  ;;  %v259_v24 = vsub.s32 2, %v882_v1  ;;  %s423_s7 = sshll.u32 %s172_s17, 4  ;;  %s421_s19 = scalar_lea.hbm %s950_s2, %s523_s15  ;;  %s424_s7 = int_to_ptr.vmem [resolvable:$true] %s423_s7 }
  0x4b   : > { %v266_v26 = vsub.s32 3, %v882_v1  ;;  %v218_v30 = vsub.s32 %v215_v28, %v882_v1  ;;  %s409_s22 = scalar_lea.sflag [#allocation4], %s868_s5  ;;  %s657_s23 = scalar_lea.vmem %s424_s7, 128 }
  0x4c   : > { %v198_v7 = vrot.slane %v174_v4, %v197_v2  ;;  %184 = vadd.xlane.f32.xlu0 %v183_v9  ;;  %v191_v12 = vrot.slane %v174_v4, %v893_v10  ;;  %v235_v21 = vrot.slane %v176_v19, %v893_v10  ;;  %v246_v22 = vrot.slane %v175_v20, %v893_v10  ;;  %p658_p9 = scmp.ne.s32.totalorder %s424_s7, %s657_s23  ;;  %p967_p11 = scmp.ne.s32.totalorder %s961_s29, 0 }
  0x4d   : > { %v253_v23 = vrot.slane %v175_v20, %v197_v2  ;;  %v260_v25 = vrot.slane %v175_v20, %v259_v24  ;;  %v267_v27 = vrot.slane %v175_v20, %v266_v26  ;;  %s733_s13 = smov [#allocation7]  }
  0x4e   : > { %200 = vbcast.lane.b32.xlu1 %v198_v7, 256  ;;  %v732_v7 = vmov 839922192   ;;  %p659_p13 = pnand %p658_p9, %p967_p11  ;;  %s661_s24 = sshll.u32 %s733_s13, 4  ;;  %s662_s24 = int_to_ptr.vmem [resolvable:$false] %s661_s24 }
  0x4f   : > { %v337_v8 = vunpack.c.l.s4 %v732_v7  ;;  %s663_s25 = scalar_lea.vmem %s662_s24, 256  ;;  %p664_p1 = scmp.lt.s32.totalorder %s424_s7, %s662_s24 }
  0x50   : > { %p660_p10 = pneg %p659_p13  ;;  %p665_p2 = scmp.lt.s32.totalorder %s663_s25, %s657_s23 }
  0x51   : > { %v338_v9 = vunpack.c.0.s8 %v337_v8 }
  0x52   : > { %p666_p0 = por %p665_p2, %p664_p1 }
  0x54   : > { %p667_p3 = pnand %p666_p0, %p660_p10 }
  0x62   : > { %193 = vbcast.lane.b32.xlu0 %v191_v12, 256 }
  0x66   : > { %237 = vbcast.lane.b32.xlu0 %v235_v21, 256 }
  0x6a   : > { %248 = vbcast.lane.b32.xlu0 %v246_v22, 256 }
  0x6e   : > { %255 = vbcast.lane.b32.xlu0 %v253_v23, 256 }
  0x72   : > { %262 = vbcast.lane.b32.xlu0 %v260_v25, 256 }
  0x76   : > { %269 = vbcast.lane.b32.xlu0 %v267_v27, 256 }
  0xc0   : > { %v201_v17 = vpop.permute.xlu1 %200 }
  0xd5   : > { %v185_v13 = vpop.xlane.xlu0 %184 }
  0xd6   : > { %v186_v14 = vmul.f32 0.00390625, %v185_v13 }
  0xd8   : > { %v205_v18 = vmul.f32 %v201_v17, %v186_v14 }
  0xd9   : > { %v194_v15 = vpop.permute.xlu0 %193 }
  0xda   : > { %v204_v16 = vmul.f32 %v194_v15, %v186_v14 }
  0xdc   : > { %209 = vperm.xlu1 %585, %v204_v16  }
  0xdd   : > { %v238_v36 = vpop.permute.xlu0 %237 }
  0xe0   : > { %212 = vperm.xlu1 %585, %v205_v18  }
  0xe1   : > { %v249_v37 = vpop.permute.xlu0 %248 }
  0xe5   : > { %v256_v38 = vpop.permute.xlu0 %255 }
  0xe9   : > { %v263_v42 = vpop.permute.xlu0 %262 }
  0xed   : > { %v270_v46 = vpop.permute.xlu0 %269 }
 0x157   : > { %v210_v29 = vpop.permute.xlu1 %209 }
 0x158   : > { %v219_v32 = vrot.slane %v210_v29, %v218_v30 }
 0x15b   : > { %v213_v31 = vpop.permute.xlu1 %212 }
 0x15c   : > { %v223_v33 = vrot.slane %v213_v31, %v218_v30 }
 0x15e   : > { %v225_v34 = vsel %vm224_vm1, %v223_v33, %v219_v32 }
 0x15f   : > { %v228_v35 = vsel %vm227_vm2, %v225_v34, 0.0 }
 0x160   : > { %229 = vadd.xlane.f32.xlu1 %v228_v35 }
 0x1e9   : > { %v230_v39 = vpop.xlane.xlu1 %229 }
 0x1ea   : > { %v240_v40 = vadd.f32 %v238_v36, %v230_v39 }
 0x1ec   : > { %v241_v41 = vmax.f32 %v240_v40, 0.0 }
 0x1ee   : > { %v275_v43 = vmul.f32 %v249_v37, %v241_v41  ;;  %v276_v44 = vmul.f32 %v256_v38, %v241_v41  ;;  %v277_v45 = vmul.f32 %v263_v42, %v241_v41  ;;  %v278_v47 = vmul.f32 %v270_v46, %v241_v41 }
 0x1f0   : > { %284 = vperm.xlu0 %586, %v275_v43   ;;  %287 = vperm.xlu1 %585, %v276_v44  }
 0x1f4   : > { %290 = vperm.xlu0 %586, %v277_v45   ;;  %323 = vbcast.lane.b32.xlu1 %v235_v21, 258 }
 0x1f5   : > { %587 = vset.pattern.permute.xlu1 %v730_v48 }
 0x1f8   : > { %293 = vperm.xlu0 %586, %v278_v47   ;;  %334 = vperm.xlu1 %587, %v175_v20  }
 0x1fc   : > { %588 = vset.pattern.permute.xlu1 %v731_v49 }
 0x1fd   : > { %363 = vperm.xlu1 %588, %v176_v19  }
 0x201   : > { %589 = vset.pattern.permute.xlu1 %v729_v11  ;;  %v341_v11 = vsub.s32 %v338_v9, %v882_v1 }
 0x26b   : > { %v285_v50 = vpop.permute.xlu0 %284  ;;  %v288_v51 = vpop.permute.xlu1 %287 }
 0x26c   : > { %v302_v53 = vrot.slane %v288_v51, %v218_v30  ;;  %v298_v54 = vrot.slane %v285_v50, %v218_v30 }
 0x26e   : > { %v311_v57 = vsel %vm224_vm1, %v302_v53, %v298_v54 }
 0x26f   : > { %v291_v52 = vpop.permute.xlu0 %290  ;;  %v324_v62 = vpop.permute.xlu1 %323 }
 0x270   : > { %v306_v55 = vrot.slane %v291_v52, %v218_v30 }
 0x272   : > { %v313_v59 = vsel %vm312_vm3, %v306_v55, %v311_v57 }
 0x273   : > { %v294_v56 = vpop.permute.xlu0 %293  ;;  %v335_v12 = vpop.permute.xlu1 %334 }
 0x274   : > { %v310_v58 = vrot.slane %v294_v56, %v218_v30  ;;  %v342_v13 = vrot.slane %v335_v12, %v341_v11 }
 0x276   : > { %v315_v60 = vsel %vm314_vm4, %v310_v58, %v313_v59  ;;  %v344_v14 = vmul.f32 %v342_v13, %v885_v3 }
 0x277   : > { %v318_v61 = vsel %vm317_vm5, %v315_v60, 0.0 }
 0x278   : > { %319 = vadd.xlane.f32.xlu0 %v318_v61  ;;  %v346_v15 = vcombine.high %v344_v14, %v344_v14  ;;  %v348_v16 = vsel %vm180_vm0, %v344_v14, 0.0  ;;  %v364_v29 = vpop.permute.xlu1 %363 }
 0x279   : > { %v349_v18 = vrot.slane %v348_v16, 4 }
 0x27a   : > { %v355_v17 = vsel %vm180_vm0, %v346_v15, 0.0 }
 0x27b   : > { %v356_v19 = vrot.slane %v355_v17, 4  ;;  %v350_v20 = vadd.f32 %v349_v18, %v348_v16 }
 0x27d   : > { %v357_v21 = vadd.f32 %v356_v19, %v355_v17  ;;  %v351_v22 = vrot.slane %v350_v20, 2 }
 0x27f   : > { %v358_v23 = vrot.slane %v357_v21, 2  ;;  %v352_v24 = vadd.f32 %v351_v22, %v350_v20 }
 0x281   : > { %v359_v25 = vadd.f32 %v358_v23, %v357_v21  ;;  %v353_v26 = vrot.slane %v352_v24, 1 }
 0x283   : > { %v360_v27 = vrot.slane %v359_v25, 1  ;;  %v354_v1 = vadd.f32 %v353_v26, %v352_v24 }
 0x285   : > { %v361_v28 = vadd.f32 %v360_v27, %v359_v25  ;;  %v366_v30 = vadd.f32 %v364_v29, %v354_v1 }
 0x287   : > { %v367_v31 = vadd.f32 %v364_v29, %v361_v28  ;;  %v515_v32 = vmul.f32 -1.442695, %v366_v30 }
 0x289   : > { %v516_v33 = vmul.f32 -1.442695, %v367_v31 }
 0x301   : > { %v320_v63 = vpop.xlane.xlu0 %319 }
 0x302   : > { %v326_v0 = vadd.f32 %v324_v62, %v320_v63 }
 0x304   : > { %v514_v2 = vmul.f32 -1.442695, %v326_v0 }
 0x306   : > { %591 = vpow2.f32 %v514_v2 }
 0x313   : > { %v592_v4 = vpop.eup %591 }
 0x314   : > { %v330_v5 = vadd.f32 1.0, %v592_v4 }
 0x316   : > { %593 = vrcp.f32 %v330_v5 }
 0x317   : > { %595 = vpow2.f32 %v515_v32 }
 0x318   : > { %597 = vpow2.f32 %v516_v33 }
 0x323   : > { %v594_v6 = vpop.eup %593 }
 0x324   : > { %382 = vperm.xlu1 %589, %v594_v6   ;;  %v596_v34 = vpop.eup %595 }
 0x325   : > { %v598_v35 = vpop.eup %597  ;;  %v374_v36 = vadd.f32 1.0, %v596_v34 }
 0x326   : > { %v375_v37 = vadd.f32 1.0, %v598_v35 }
 0x327   : > { %599 = vrcp.f32 %v374_v36 }
 0x328   : > { %601 = vrcp.f32 %v375_v37 }
 0x334   : > { %v600_v38 = vpop.eup %599 }
 0x335   : > { %v602_v39 = vpop.eup %601  ;;  %v396_v40 = vrot.slane %v600_v38, %v893_v10 }
 0x336   : > { %v400_v41 = vrot.slane %v602_v39, %v893_v10 }
 0x338   : > { %v403_v42 = vcombine.low %v396_v40, %v400_v41 }
 0x33a   : > { %v405_v45 = vmul.f32 %v403_v42, %v885_v3 }
 0x39f   : > { %v383_v43 = vpop.permute.xlu1 %382 }
 0x3a0   : > { %v390_v44 = vrot.slane %v383_v43, %v341_v11 }
 0x3a2   : > { %v392_v46 = vmul.f32 %v390_v44, %v885_v3 }
 0x3a4   : > { %v406_v47 = vmax.f32 %v392_v46, %v405_v45 }
 0x3a6   : > { %407 = vst [vmem:[%s172_s17] sm:$0xff] %v406_v47 }
 0x3a7   : > { %670 = shalt.err (!%p667_p3)
}
 0x3a8   : > { %s671_s26 = scalar_lea.hbm %s421_s19, 128  ;;  %s675_s3 = scalar_lea.hbm %s950_s2, 256 }
 0x3a9   : > { %p672_p12 = scmp.ne.s32.totalorder %s421_s19, %s671_s26  ;;  %p676_p4 = scmp.lt.s32.totalorder %s421_s19, %s950_s2 }
 0x3aa   : > { %p677_p6 = scmp.lt.s32.totalorder %s675_s3, %s671_s26 }
 0x3ab   : > { %p673_p5 = pnand %p672_p12, %p967_p11 }
 0x3ac   : > { %p678_p8 = por %p677_p6, %p676_p4 }
 0x3ad   : > { %p674_p7 = pneg %p673_p5 }
 0x3af   : > { %p679_p9 = pnand %p678_p8, %p674_p7 }
 0x3b1   : > { %682 = shalt.err (!%p679_p9)
}
 0x3b2   : > { %530 = dma.vmem_to_hbm [thread:$0]  (%p967_p11), %s424_s7, 128, %s421_s19, %s409_s22  }
 0x3b3 PF: > { %s435_s6 = sand.u32 1, %s713_s9   ;;  %p968_p13 = scmp.ne.s32.totalorder %s956_s16, 0 }
 0x3b4   : > { %p969_p10 = scmp.ge.s32.totalorder %s725_s12, 2  ;;  %s436_s8 = scalar_lea.sflag [#allocation4], %s435_s6 }
 0x3b6   : > { %p541_p1 = pnand %p969_p10, %p968_p13 }
 0x3b8   : > { %p542_p2 = pneg %p541_p1 }
 0x3ba   : > { %708 = dma.done.wait (%p542_p2), %s436_s8, 128  }
 0x3bb   : > { %710 = vsyncadd (%p542_p2), %s436_s8, 4294967168  ;;  %p16_p0 = scmp.ge.s32.totalorder %s797_s20, 4   ;;  %s970_s9 = smov %s717_s10 }
 0x3bc   : > { %s971_s10 = smov %s721_s11  ;;  %s972_s11 = smov %s824_s28 }
 0x3bd   : > { %s973_s12 = smov %s797_s20  ;;  %18 = sbr.rel (!%p16_p0) target bundleno = 6 (0x6), region = 77 }
 0x3c2   :  { %441 = vsyncpa [#allocation3], 1 }
 0x3c3   :  { %443 = vsyncpa [#allocation3 + $0x1], 1 }
 0x3c4   :  { %444 = vsyncpa [#allocation6], 1 }
 0x3c5   :  { %445 = vsyncpa [#allocation4], 1 }
 0x3c6   :  { %447 = vsyncpa [#allocation4 + $0x1], 1 }

</bundles_post_ra>
